<compile_context>
chip_gen: v7x
topology: tpu7x:2x2x1
jax: 0.10.0
libtpu: 0.0.40
codegen_flags: <defaults>
</compile_context>

<pallas_src>
import functools

import jax
import jax.numpy as jnp
import numpy as np
from jax import lax
from jax.experimental import pallas as pl
from jax.experimental.pallas import tpu as pltpu

# ---- stand-ins for myconfig / WrapperConfig (synthetic, deterministic) ----
BZ = 2
MAX_SEQ_LENGTH = 16
EMBED_SIZE = 32
N_CANDIDATES = 4
N_TRIGGER = 4
PROMPT_LENGTH = 2
TEMPERATURE = 0.5
GUMBELHARD = False
LEAKY_SLOPE = 0.01   # nn.LeakyReLU default negative_slope

_VMEM = functools.partial(pl.BlockSpec, memory_space=pltpu.MemorySpace.VMEM)
_SMEM = functools.partial(pl.BlockSpec, memory_space=pltpu.MemorySpace.SMEM)


# --------------------------------------------------------------------------
# Fused kernel: single invocation, batch statically unrolled (BZ is tiny).
#   clean rows    : one [S, D] copy (pl.when gated)
#   poisoned rows : decomposed Q_matrix score -> gumbel-softmax -> W_star,
#                   remain|pad base write + one dynamic-window store of W_star
#   all rows      : P dynamic row stores for the block_flag replacement
# --------------------------------------------------------------------------
def _fused_kernel(meta_ref,     # SMEM i32 [BZ, 2+P] (insert_id, poison, flag positions)
                  raw_ref,      # VMEM f32 [BZ, S, D]  raw embeddings
                  gumbel_ref,   # VMEM f32 [BZ, C, 1]  gumbel noise
                  qw_ref,       # VMEM f32 [S, D]      Q_matrix weight (reshaped)
                  qb_ref,       # SMEM f32 [1, 1]      Q_matrix bias
                  trig_ref,     # VMEM f32 [C, T, D]   trigger embeddings
                  repl_ref,     # VMEM f32 [P, D]      prompt-MLP output (hoisted)
                  out_ref,      # VMEM f32 [BZ, S, D]
                  *, hard, bz):
    _, seq, dim = raw_ref.shape
    n_cand, n_trig, _ = trig_ref.shape
    p_len = repl_ref.shape[0]

    for b in range(bz):                         # batch folded into one step
        poison = meta_ref[b, 1]
        raw = raw_ref[b]                        # [S, D]

        # ---- clean rows: just copy; skip all poison math -------------------
        @pl.when(poison == 0)
        def _():
            out_ref[b, :, :] = raw

        # ---- poisoned rows: Q-score -> gumbel-softmax -> W_star mix --------
        @pl.when(poison == 1)
        def _():
            insert_id = meta_ref[b, 0]          # clamped to <= S - T in wrapper
            pad_full = jnp.broadcast_to(raw[seq - 1:seq, :], (seq, dim))
            pos = lax.broadcasted_iota(jnp.int32, (seq, 1), 0)
            remain_m = jnp.broadcast_to(pos < insert_id, (seq, dim))
            pad_m = jnp.broadcast_to(pos >= insert_id + n_trig, (seq, dim))
            zeros = jnp.zeros((seq, dim), jnp.float32)

            # Q_matrix score: candidate-independent part (remain + pad rows)
            qw = qw_ref[...]
            shared_rows = jnp.where(remain_m, raw,
                                    jnp.where(pad_m, pad_full, zeros))
            shared = jnp.sum(jnp.sum(shared_rows * qw, axis=-1, keepdims=True),
                             axis=0, keepdims=True)                 # [1, 1]

            # candidate-dependent part: only the T trigger rows differ
            qw_win = qw_ref[pl.ds(insert_id, n_trig), :]             # [T, D]
            trig = trig_ref[...]                                     # [C, T, D]
            trig_rows = jnp.sum(trig * qw_win[None, :, :], axis=-1)  # [C, T]
            trig_score = jnp.sum(trig_rows, axis=-1, keepdims=True)  # [C, 1]

            scores = shared + trig_score + qb_ref[0, 0]              # [C, 1]
            scores = jnp.where(scores >= 0.0, scores, LEAKY_SLOPE * scores)

            # gumbel-softmax over the candidate axis
            logits = (scores + gumbel_ref[b]) * (1.0 / TEMPERATURE)
            m = jnp.max(logits, axis=0, keepdims=True)
            e = jnp.exp(logits - m)
            y = e / jnp.sum(e, axis=0, keepdims=True)                # [C, 1]
            if hard:
                # exact forward value of torch's hard one-hot (first argmax).
                # TODO(synk): straight-through estimator (y_hard - y.detach() + y)
                # is a gradient-only construct; forward values are identical.
                cand = lax.broadcasted_iota(jnp.int32, (n_cand, 1), 0)
                first = jnp.min(jnp.where(
                    y >= jnp.max(y, axis=0, keepdims=True), cand, n_cand),
                    axis=0, keepdims=True)
                y = jnp.where(cand == first, 1.0, 0.0).astype(jnp.float32)

            # W_star = probs-weighted mix of trigger candidates       [T, D]
            w_star = jnp.sum(y[:, :, None] * trig, axis=0)

            # mix_matrix: remain | W_star | pad
            out_ref[b, :, :] = jnp.where(remain_m, raw, pad_full)
            out_ref[b, pl.ds(insert_id, n_trig), :] = w_star

        # ---- block_flag replacement: P dynamic row stores (always last) ----
        for k in range(p_len):
            pos_k = meta_ref[b, 2 + k]
            out_ref[b, pl.ds(pos_k, 1), :] = repl_ref[k:k + 1, :]


# --------------------------------------------------------------------------
# Jit-able wrapper (equivalent of ContinuousPrompt._generate_inputs, 'mlp').
# --------------------------------------------------------------------------
def generate_inputs(params, raw_embeds, batch, key):
    bz, seq, dim = raw_embeds.shape

    attn = batch["attention_mask"]
    insert_id = jnp.minimum(jnp.sum(attn, axis=1).astype(jnp.int32),
                            seq - N_TRIGGER)
    poison = batch["poison"].astype(jnp.int32)

    # block_flag -> the P flagged row positions (exactly P per row, matching
    # the PyTorch reshape to (bz, prompt_length, 2)).
    bf = batch["block_flag"].astype(jnp.int32)
    cums = jnp.cumsum(bf, axis=1)
    idx = jnp.arange(seq, dtype=jnp.int32)
    k_ids = jnp.arange(PROMPT_LENGTH, dtype=jnp.int32)
    sel = (bf[:, :, None] == 1) & (cums[:, :, None] == k_ids[None, None, :] + 1)
    flag_pos = jnp.sum(jnp.where(sel, idx[None, :, None], 0), axis=1)  # [BZ, P]

    meta = jnp.concatenate(
        [insert_id[:, None], poison[:, None], flag_pos], axis=1).astype(jnp.int32)

    # gumbel noise: torch.rand -> -log(-log(U+eps)+eps), one draw per row
    u = jax.random.uniform(key, (bz, N_CANDIDATES, 1), dtype=jnp.float32)
    gumbel = -jnp.log(-jnp.log(u + 1e-20) + 1e-20)

    # prompt-encoder MLP hoisted out of the kernel (batch-invariant, tiny)
    h = jnp.maximum(jnp.dot(params["prompt_embeddings"], params["mlp_w1"])
                    + params["mlp_b1"], 0.0)
    repl = jnp.dot(h, params["mlp_w2"]) + params["mlp_b2"]          # [P, D]

    qw2d = params["q_w"].reshape(seq, dim)                           # [S, D]

    out = pl.pallas_call(
        functools.partial(_fused_kernel, hard=GUMBELHARD, bz=bz),
        out_shape=jax.ShapeDtypeStruct((bz, seq, dim), jnp.float32),
        in_specs=[
            _SMEM(),   # meta   [BZ, 2+P] i32
            _VMEM(),   # raw    [BZ, S, D]
            _VMEM(),   # gumbel [BZ, C, 1]
            _VMEM(),   # q_w    [S, D]
            _SMEM(),   # q_b    [1, 1]
            _VMEM(),   # trig   [C, T, D]
            _VMEM(),   # repl   [P, D]
        ],
        out_specs=_VMEM(),
    )(meta, raw_embeds.astype(jnp.float32), gumbel, qw2d, params["q_b"],
      params["trigger_embeds"], repl)

    return {"inputs_embeds": out, "attention_mask": attn}


forward = jax.jit(generate_inputs)
# TODO(synk): the backbone AutoModelForMaskedLM forward is an external
# pretrained model with no in-script equivalent; we return the generated inputs.


# --------------------------------------------------------------------------
# Synthetic params + pure-NumPy reference (mirrors the PyTorch math).
# --------------------------------------------------------------------------
def init_params(key):
    ks = jax.random.split(key, 7)
    p = {}
    p["prompt_embeddings"] = 0.02 * jax.random.normal(
        ks[0], (PROMPT_LENGTH, EMBED_SIZE), jnp.float32)
    p["q_w"] = 0.02 * jax.random.normal(
        ks[1], (1, MAX_SEQ_LENGTH * EMBED_SIZE), jnp.float32)
    p["q_b"] = jnp.zeros((1, 1), jnp.float32)
    p["mlp_w1"] = 0.02 * jax.random.normal(ks[2], (EMBED_SIZE, EMBED_SIZE), jnp.float32)
    p["mlp_b1"] = jnp.zeros((1, EMBED_SIZE), jnp.float32)
    p["mlp_w2"] = 0.02 * jax.random.normal(ks[3], (EMBED_SIZE, EMBED_SIZE), jnp.float32)
    p["mlp_b2"] = jnp.zeros((1, EMBED_SIZE), jnp.float32)
    # trigger embeddings (get_trigger_embedding output), synthetic: [C, T, D]
    p["trigger_embeds"] = 0.02 * jax.random.normal(
        ks[4], (N_CANDIDATES, N_TRIGGER, EMBED_SIZE), jnp.float32)
    return p


def _reference(params, raw_embeds, batch, key):
    """Host-side replica of the PyTorch forward, for correctness checking."""
    bz, seq, dim = raw_embeds.shape
    u = jax.random.uniform(key, (bz, N_CANDIDATES, 1), dtype=jnp.float32)
    gumbel = np.asarray(-jnp.log(-jnp.log(u + 1e-20) + 1e-20))
    raw = np.asarray(raw_embeds).copy()
    qw = np.asarray(params["q_w"])[0]
    qb = float(np.asarray(params["q_b"])[0, 0])
    trig = np.asarray(params["trigger_embeds"])
    attn = np.asarray(batch["attention_mask"])
    poison = np.asarray(batch["poison"])
    for b in range(bz):
        if not bool(poison[b]):
            continue
        ins = min(int(attn[b].sum()), seq - N_TRIGGER)
        pad = raw[b, -1:]
        remain = raw[b, :ins]
        n_pad = seq - ins - N_TRIGGER
        parts = [np.broadcast_to(remain[None], (N_CANDIDATES, ins, dim)), trig]
        if n_pad:
            parts.append(np.broadcast_to(pad[None], (N_CANDIDATES, n_pad, dim)))
        after = np.concatenate(parts, axis=1).reshape(N_CANDIDATES, seq * dim)
        scores = after @ qw + qb
        scores = np.where(scores >= 0, scores, LEAKY_SLOPE * scores)
        logits = (scores[:, None] + gumbel[b]) / TEMPERATURE
        e = np.exp(logits - logits.max(axis=0, keepdims=True))
        y = e / e.sum(axis=0, keepdims=True)
        if GUMBELHARD:
            y_h = np.zeros_like(y)
            y_h[np.argmax(y[:, 0]), 0] = 1.0
            y = y_h
        w_star = (y * trig.reshape(N_CANDIDATES, -1)).sum(0).reshape(N_TRIGGER, dim)
        mix_parts = [remain, w_star]
        if n_pad:
            mix_parts.append(np.broadcast_to(pad, (n_pad, dim)))
        raw[b] = np.concatenate(mix_parts, axis=0)
    pe = np.asarray(params["prompt_embeddings"])
    h = np.maximum(pe @ np.asarray(params["mlp_w1"]) + np.asarray(params["mlp_b1"]), 0.0)
    repl = h @ np.asarray(params["mlp_w2"]) + np.asarray(params["mlp_b2"])
    bf = np.asarray(batch["block_flag"])
    for b in range(bz):
        k = 0
        for s in range(seq):
            if bf[b, s] == 1:
                raw[b, s] = repl[k]
                k += 1
    return raw


if __name__ == "__main__":
    key = jax.random.PRNGKey(0)
    pkey, dkey, gkey = jax.random.split(key, 3)

    params = init_params(pkey)

    raw_embeds = 0.02 * jax.random.normal(
        dkey, (BZ, MAX_SEQ_LENGTH, EMBED_SIZE), jnp.float32)
    attention_mask = jnp.array([[1] * 10 + [0] * 6,
                                [1] * 14 + [0] * 2], dtype=jnp.int32)
    block_flag = (jnp.zeros((BZ, MAX_SEQ_LENGTH), jnp.int32)
                  .at[:, 1].set(1).at[:, 3].set(1))   # prompt_length=2 slots per row
    poison = jnp.array([True, False])

    batch = {"attention_mask": attention_mask,
             "block_flag": block_flag,
             "poison": poison}

    out = forward(params, raw_embeds, batch, gkey)
    jax.block_until_ready(out["inputs_embeds"])

    assert out["inputs_embeds"].shape == (BZ, MAX_SEQ_LENGTH, EMBED_SIZE)
    assert out["inputs_embeds"].dtype == jnp.float32

    ref = _reference(params, raw_embeds, batch, gkey)
    np.testing.assert_allclose(np.asarray(out["inputs_embeds"]), ref,
                               rtol=1e-4, atol=1e-5)
    print("KERNEL_OK")
</pallas_src>

<mosaic_0001>
module attributes {stable_mosaic.version = 11 : i64} {
  func.func @_fused_kernel(%arg0: memref<2x4xi32, #tpu.memory_space<smem>>, %arg1: memref<2x16x32xf32, #tpu.memory_space<vmem>>, %arg2: memref<2x4x1xf32, #tpu.memory_space<vmem>>, %arg3: memref<16x32xf32, #tpu.memory_space<vmem>>, %arg4: memref<1x1xf32, #tpu.memory_space<smem>>, %arg5: memref<4x4x32xf32, #tpu.memory_space<vmem>>, %arg6: memref<2x32xf32, #tpu.memory_space<vmem>>, %arg7: memref<2x16x32xf32, #tpu.memory_space<vmem>>) attributes {dimension_semantics = [], scalar_prefetch = 0 : i64, scratch_operands = 0 : i64, tpu.core_type = #tpu.core_type<tc>} {
    %c0 = arith.constant 0 : index
    %c1 = arith.constant 1 : index
    %0 = memref.load %arg0[%c0, %c1] : memref<2x4xi32, #tpu.memory_space<smem>>
    %c0_0 = arith.constant 0 : index
    %c0_1 = arith.constant 0 : index
    %c0_2 = arith.constant 0 : index
    %1 = vector.load %arg1[%c0_0, %c0_1, %c0_2] : memref<2x16x32xf32, #tpu.memory_space<vmem>>, vector<1x16x32xf32>
    %2 = vector.shape_cast %1 : vector<1x16x32xf32> to vector<16x32xf32>
    %c0_i32 = arith.constant 0 : i32
    %3 = arith.cmpi eq, %0, %c0_i32 : i32
    %4 = arith.extui %3 : i1 to i32
    %c0_i32_3 = arith.constant 0 : i32
    %5 = arith.cmpi ne, %4, %c0_i32_3 : i32
    scf.if %5 {
      %c0_36 = arith.constant 0 : index
      %c0_37 = arith.constant 0 : index
      %c0_38 = arith.constant 0 : index
      %42 = vector.load %arg7[%c0_36, %c0_37, %c0_38] : memref<2x16x32xf32, #tpu.memory_space<vmem>>, vector<1x16x32xf32>
      %43 = vector.shape_cast %42 : vector<1x16x32xf32> to vector<16x32xf32>
      %44 = vector.shape_cast %2 : vector<16x32xf32> to vector<1x16x32xf32>
      tpu.vector_store %arg7[%c0_36, %c0_37, %c0_38], %44 {strides = array<i32>} : memref<2x16x32xf32, #tpu.memory_space<vmem>>, vector<1x16x32xf32>,
    } else {
    }
    %c1_i32 = arith.constant 1 : i32
    %6 = arith.cmpi eq, %0, %c1_i32 : i32
    %7 = arith.extui %6 : i1 to i32
    %c0_i32_4 = arith.constant 0 : i32
    %8 = arith.cmpi ne, %7, %c0_i32_4 : i32
    scf.if %8 {
      %c0_36 = arith.constant 0 : index
      %c0_37 = arith.constant 0 : index
      %42 = memref.load %arg0[%c0_36, %c0_37] : memref<2x4xi32, #tpu.memory_space<smem>>
      %43 = vector.extract_strided_slice %2 {offsets = [15, 0], sizes = [1, 32], strides = [1, 1]} : vector<16x32xf32> to vector<1x32xf32>
      %44 = vector.shape_cast %43 : vector<1x32xf32> to vector<1x32xf32>
      %45 = vector.broadcast %44 : vector<1x32xf32> to vector<16x32xf32>
      %46 = tpu.iota {dimensions = array<i32: 0>} : vector<16x1xi32>
      %47 = vector.broadcast %42 : i32 to vector<16x1xi32>
      %48 = arith.cmpi slt, %46, %47 : vector<16x1xi32>
      %49 = vector.shape_cast %48 : vector<16x1xi1> to vector<16x1xi1>
      %50 = vector.broadcast %49 : vector<16x1xi1> to vector<16x32xi1>
      %c4_i32 = arith.constant 4 : i32
      %51 = arith.addi %42, %c4_i32 : i32
      %52 = vector.broadcast %51 : i32 to vector<16x1xi32>
      %53 = arith.cmpi sge, %46, %52 : vector<16x1xi32>
      %54 = vector.shape_cast %53 : vector<16x1xi1> to vector<16x1xi1>
      %55 = vector.broadcast %54 : vector<16x1xi1> to vector<16x32xi1>
      %cst = arith.constant 0.000000e+00 : f32
      %56 = vector.broadcast %cst : f32 to vector<16x32xf32>
      %c0_38 = arith.constant 0 : index
      %c0_39 = arith.constant 0 : index
      %57 = vector.load %arg3[%c0_38, %c0_39] : memref<16x32xf32, #tpu.memory_space<vmem>>, vector<16x32xf32>
      %58 = arith.select %55, %45, %56 : vector<16x32xi1>, vector<16x32xf32>
      %59 = arith.select %50, %2, %58 : vector<16x32xi1>, vector<16x32xf32>
      %60 = arith.mulf %59, %57 : vector<16x32xf32>
      %cst_40 = arith.constant dense<0.000000e+00> : vector<16xf32>
      %61 = vector.multi_reduction <add>, %60, %cst_40 [1] : vector<16x32xf32> to vector<16xf32>
      %62 = vector.shape_cast %61 : vector<16xf32> to vector<16x1xf32>
      %cst_41 = arith.constant dense<0.000000e+00> : vector<1xf32>
      %63 = vector.multi_reduction <add>, %62, %cst_41 [0] : vector<16x1xf32> to vector<1xf32>
      %64 = vector.shape_cast %63 : vector<1xf32> to vector<1x1xf32>
      %65 = arith.index_cast %42 : i32 to index
      %c0_42 = arith.constant 0 : index
      %66 = vector.load %arg3[%65, %c0_42] : memref<16x32xf32, #tpu.memory_space<vmem>>, vector<4x32xf32>
      %c0_43 = arith.constant 0 : index
      %c0_44 = arith.constant 0 : index
      %c0_45 = arith.constant 0 : index
      %67 = vector.load %arg5[%c0_43, %c0_44, %c0_45] : memref<4x4x32xf32, #tpu.memory_space<vmem>>, vector<4x4x32xf32>
      %68 = vector.shape_cast %66 : vector<4x32xf32> to vector<1x4x32xf32>
      %69 = vector.broadcast %68 : vector<1x4x32xf32> to vector<4x4x32xf32>
      %70 = arith.mulf %67, %69 : vector<4x4x32xf32>
      %cst_46 = arith.constant dense<0.000000e+00> : vector<4x4xf32>
      %71 = vector.multi_reduction <add>, %70, %cst_46 [2] : vector<4x4x32xf32> to vector<4x4xf32>
      %cst_47 = arith.constant dense<0.000000e+00> : vector<4xf32>
      %72 = vector.multi_reduction <add>, %71, %cst_47 [1] : vector<4x4xf32> to vector<4xf32>
      %73 = vector.shape_cast %72 : vector<4xf32> to vector<4x1xf32>
      %74 = vector.broadcast %64 : vector<1x1xf32> to vector<4x1xf32>
      %75 = arith.addf %74, %73 : vector<4x1xf32>
      %c0_48 = arith.constant 0 : index
      %c0_49 = arith.constant 0 : index
      %76 = memref.load %arg4[%c0_48, %c0_49] : memref<1x1xf32, #tpu.memory_space<smem>>
      %77 = vector.broadcast %76 : f32 to vector<4x1xf32>
      %78 = arith.addf %75, %77 : vector<4x1xf32>
      %cst_50 = arith.constant 0.000000e+00 : f32
      %79 = vector.broadcast %cst_50 : f32 to vector<4x1xf32>
      %80 = arith.cmpf oge, %78, %79 : vector<4x1xf32>
      %cst_51 = arith.constant 0.00999999977 : f32
      %81 = vector.broadcast %cst_51 : f32 to vector<4x1xf32>
      %82 = arith.mulf %81, %78 : vector<4x1xf32>
      %83 = arith.select %80, %78, %82 : vector<4x1xi1>, vector<4x1xf32>
      %c0_52 = arith.constant 0 : index
      %c0_53 = arith.constant 0 : index
      %c0_54 = arith.constant 0 : index
      %84 = vector.load %arg2[%c0_52, %c0_53, %c0_54] : memref<2x4x1xf32, #tpu.memory_space<vmem>>, vector<1x4x1xf32>
      %85 = vector.shape_cast %84 : vector<1x4x1xf32> to vector<4x1xf32>
      %86 = arith.addf %83, %85 : vector<4x1xf32>
      %cst_55 = arith.constant 2.000000e+00 : f32
      %87 = vector.broadcast %cst_55 : f32 to vector<4x1xf32>
      %88 = arith.mulf %86, %87 : vector<4x1xf32>
      %cst_56 = arith.constant dense<0xFF800000> : vector<1xf32>
      %89 = vector.multi_reduction <maximumf>, %88, %cst_56 [0] : vector<4x1xf32> to vector<1xf32>
      %90 = vector.shape_cast %89 : vector<1xf32> to vector<1x1xf32>
      %91 = vector.broadcast %90 : vector<1x1xf32> to vector<4x1xf32>
      %92 = arith.subf %88, %91 : vector<4x1xf32>
      %93 = math.exp %92 : vector<4x1xf32>
      %cst_57 = arith.constant dense<0.000000e+00> : vector<1xf32>
      %94 = vector.multi_reduction <add>, %93, %cst_57 [0] : vector<4x1xf32> to vector<1xf32>
      %95 = vector.shape_cast %94 : vector<1xf32> to vector<1x1xf32>
      %96 = vector.broadcast %95 : vector<1x1xf32> to vector<4x1xf32>
      %97 = arith.divf %93, %96 : vector<4x1xf32>
      %98 = vector.shape_cast %97 : vector<4x1xf32> to vector<4x1x1xf32>
      %99 = vector.broadcast %98 : vector<4x1x1xf32> to vector<4x4x32xf32>
      %100 = arith.mulf %99, %67 : vector<4x4x32xf32>
      %cst_58 = arith.constant dense<0.000000e+00> : vector<4x32xf32>
      %101 = vector.multi_reduction <add>, %100, %cst_58 [0] : vector<4x4x32xf32> to vector<4x32xf32>
      %102 = arith.select %50, %2, %45 : vector<16x32xi1>, vector<16x32xf32>
      %c0_59 = arith.constant 0 : index
      %c0_60 = arith.constant 0 : index
      %c0_61 = arith.constant 0 : index
      %103 = vector.load %arg7[%c0_59, %c0_60, %c0_61] : memref<2x16x32xf32, #tpu.memory_space<vmem>>, vector<1x16x32xf32>
      %104 = vector.shape_cast %103 : vector<1x16x32xf32> to vector<16x32xf32>
      %105 = vector.shape_cast %102 : vector<16x32xf32> to vector<1x16x32xf32>
      tpu.vector_store %arg7[%c0_59, %c0_60, %c0_61], %105 {strides = array<i32>} : memref<2x16x32xf32, #tpu.memory_space<vmem>>, vector<1x16x32xf32>,
      %c0_62 = arith.constant 0 : index
      %106 = arith.index_cast %42 : i32 to index
      %c0_63 = arith.constant 0 : index
      %107 = vector.load %arg7[%c0_62, %106, %c0_63] : memref<2x16x32xf32, #tpu.memory_space<vmem>>, vector<1x4x32xf32>
      %108 = vector.shape_cast %107 : vector<1x4x32xf32> to vector<4x32xf32>
      %109 = vector.shape_cast %101 : vector<4x32xf32> to vector<1x4x32xf32>
      tpu.vector_store %arg7[%c0_62, %106, %c0_63], %109 {strides = array<i32>} : memref<2x16x32xf32, #tpu.memory_space<vmem>>, vector<1x4x32xf32>,
    } else {
    }
    %c0_5 = arith.constant 0 : index
    %c2 = arith.constant 2 : index
    %9 = memref.load %arg0[%c0_5, %c2] : memref<2x4xi32, #tpu.memory_space<smem>>
    %c0_6 = arith.constant 0 : index
    %c0_7 = arith.constant 0 : index
    %10 = vector.load %arg6[%c0_6, %c0_7] : memref<2x32xf32, #tpu.memory_space<vmem>>, vector<1x32xf32>
    %c0_8 = arith.constant 0 : index
    %11 = arith.index_cast %9 : i32 to index
    %c0_9 = arith.constant 0 : index
    %12 = vector.load %arg7[%c0_8, %11, %c0_9] : memref<2x16x32xf32, #tpu.memory_space<vmem>>, vector<1x1x32xf32>
    %13 = vector.shape_cast %12 : vector<1x1x32xf32> to vector<1x32xf32>
    %14 = vector.shape_cast %10 : vector<1x32xf32> to vector<1x1x32xf32>
    tpu.vector_store %arg7[%c0_8, %11, %c0_9], %14 {strides = array<i32>} : memref<2x16x32xf32, #tpu.memory_space<vmem>>, vector<1x1x32xf32>,
    %c0_10 = arith.constant 0 : index
    %c3 = arith.constant 3 : index
    %15 = memref.load %arg0[%c0_10, %c3] : memref<2x4xi32, #tpu.memory_space<smem>>
    %c1_11 = arith.constant 1 : index
    %c0_12 = arith.constant 0 : index
    %16 = vector.load %arg6[%c1_11, %c0_12] : memref<2x32xf32, #tpu.memory_space<vmem>>, vector<1x32xf32>
    %c0_13 = arith.constant 0 : index
    %17 = arith.index_cast %15 : i32 to index
    %c0_14 = arith.constant 0 : index
    %18 = vector.load %arg7[%c0_13, %17, %c0_14] : memref<2x16x32xf32, #tpu.memory_space<vmem>>, vector<1x1x32xf32>
    %19 = vector.shape_cast %18 : vector<1x1x32xf32> to vector<1x32xf32>
    %20 = vector.shape_cast %16 : vector<1x32xf32> to vector<1x1x32xf32>
    tpu.vector_store %arg7[%c0_13, %17, %c0_14], %20 {strides = array<i32>} : memref<2x16x32xf32, #tpu.memory_space<vmem>>, vector<1x1x32xf32>,
    %c1_15 = arith.constant 1 : index
    %c1_16 = arith.constant 1 : index
    %21 = memref.load %arg0[%c1_15, %c1_16] : memref<2x4xi32, #tpu.memory_space<smem>>
    %c1_17 = arith.constant 1 : index
    %c0_18 = arith.constant 0 : index
    %c0_19 = arith.constant 0 : index
    %22 = vector.load %arg1[%c1_17, %c0_18, %c0_19] : memref<2x16x32xf32, #tpu.memory_space<vmem>>, vector<1x16x32xf32>
    %23 = vector.shape_cast %22 : vector<1x16x32xf32> to vector<16x32xf32>
    %c0_i32_20 = arith.constant 0 : i32
    %24 = arith.cmpi eq, %21, %c0_i32_20 : i32
    %25 = arith.extui %24 : i1 to i32
    %c0_i32_21 = arith.constant 0 : i32
    %26 = arith.cmpi ne, %25, %c0_i32_21 : i32
    scf.if %26 {
      %c1_36 = arith.constant 1 : index
      %c0_37 = arith.constant 0 : index
      %c0_38 = arith.constant 0 : index
      %42 = vector.load %arg7[%c1_36, %c0_37, %c0_38] : memref<2x16x32xf32, #tpu.memory_space<vmem>>, vector<1x16x32xf32>
      %43 = vector.shape_cast %42 : vector<1x16x32xf32> to vector<16x32xf32>
      %44 = vector.shape_cast %23 : vector<16x32xf32> to vector<1x16x32xf32>
      tpu.vector_store %arg7[%c1_36, %c0_37, %c0_38], %44 {strides = array<i32>} : memref<2x16x32xf32, #tpu.memory_space<vmem>>, vector<1x16x32xf32>,
    } else {
    }
    %c1_i32_22 = arith.constant 1 : i32
    %27 = arith.cmpi eq, %21, %c1_i32_22 : i32
    %28 = arith.extui %27 : i1 to i32
    %c0_i32_23 = arith.constant 0 : i32
    %29 = arith.cmpi ne, %28, %c0_i32_23 : i32
    scf.if %29 {
      %c1_36 = arith.constant 1 : index
      %c0_37 = arith.constant 0 : index
      %42 = memref.load %arg0[%c1_36, %c0_37] : memref<2x4xi32, #tpu.memory_space<smem>>
      %43 = vector.extract_strided_slice %23 {offsets = [15, 0], sizes = [1, 32], strides = [1, 1]} : vector<16x32xf32> to vector<1x32xf32>
      %44 = vector.shape_cast %43 : vector<1x32xf32> to vector<1x32xf32>
      %45 = vector.broadcast %44 : vector<1x32xf32> to vector<16x32xf32>
      %46 = tpu.iota {dimensions = array<i32: 0>} : vector<16x1xi32>
      %47 = vector.broadcast %42 : i32 to vector<16x1xi32>
      %48 = arith.cmpi slt, %46, %47 : vector<16x1xi32>
      %49 = vector.shape_cast %48 : vector<16x1xi1> to vector<16x1xi1>
      %50 = vector.broadcast %49 : vector<16x1xi1> to vector<16x32xi1>
      %c4_i32 = arith.constant 4 : i32
      %51 = arith.addi %42, %c4_i32 : i32
      %52 = vector.broadcast %51 : i32 to vector<16x1xi32>
      %53 = arith.cmpi sge, %46, %52 : vector<16x1xi32>
      %54 = vector.shape_cast %53 : vector<16x1xi1> to vector<16x1xi1>
      %55 = vector.broadcast %54 : vector<16x1xi1> to vector<16x32xi1>
      %cst = arith.constant 0.000000e+00 : f32
      %56 = vector.broadcast %cst : f32 to vector<16x32xf32>
      %c0_38 = arith.constant 0 : index
      %c0_39 = arith.constant 0 : index
      %57 = vector.load %arg3[%c0_38, %c0_39] : memref<16x32xf32, #tpu.memory_space<vmem>>, vector<16x32xf32>
      %58 = arith.select %55, %45, %56 : vector<16x32xi1>, vector<16x32xf32>
      %59 = arith.select %50, %23, %58 : vector<16x32xi1>, vector<16x32xf32>
      %60 = arith.mulf %59, %57 : vector<16x32xf32>
      %cst_40 = arith.constant dense<0.000000e+00> : vector<16xf32>
      %61 = vector.multi_reduction <add>, %60, %cst_40 [1] : vector<16x32xf32> to vector<16xf32>
      %62 = vector.shape_cast %61 : vector<16xf32> to vector<16x1xf32>
      %cst_41 = arith.constant dense<0.000000e+00> : vector<1xf32>
      %63 = vector.multi_reduction <add>, %62, %cst_41 [0] : vector<16x1xf32> to vector<1xf32>
      %64 = vector.shape_cast %63 : vector<1xf32> to vector<1x1xf32>
      %65 = arith.index_cast %42 : i32 to index
      %c0_42 = arith.constant 0 : index
      %66 = vector.load %arg3[%65, %c0_42] : memref<16x32xf32, #tpu.memory_space<vmem>>, vector<4x32xf32>
      %c0_43 = arith.constant 0 : index
      %c0_44 = arith.constant 0 : index
      %c0_45 = arith.constant 0 : index
      %67 = vector.load %arg5[%c0_43, %c0_44, %c0_45] : memref<4x4x32xf32, #tpu.memory_space<vmem>>, vector<4x4x32xf32>
      %68 = vector.shape_cast %66 : vector<4x32xf32> to vector<1x4x32xf32>
      %69 = vector.broadcast %68 : vector<1x4x32xf32> to vector<4x4x32xf32>
      %70 = arith.mulf %67, %69 : vector<4x4x32xf32>
      %cst_46 = arith.constant dense<0.000000e+00> : vector<4x4xf32>
      %71 = vector.multi_reduction <add>, %70, %cst_46 [2] : vector<4x4x32xf32> to vector<4x4xf32>
      %cst_47 = arith.constant dense<0.000000e+00> : vector<4xf32>
      %72 = vector.multi_reduction <add>, %71, %cst_47 [1] : vector<4x4xf32> to vector<4xf32>
      %73 = vector.shape_cast %72 : vector<4xf32> to vector<4x1xf32>
      %74 = vector.broadcast %64 : vector<1x1xf32> to vector<4x1xf32>
      %75 = arith.addf %74, %73 : vector<4x1xf32>
      %c0_48 = arith.constant 0 : index
      %c0_49 = arith.constant 0 : index
      %76 = memref.load %arg4[%c0_48, %c0_49] : memref<1x1xf32, #tpu.memory_space<smem>>
      %77 = vector.broadcast %76 : f32 to vector<4x1xf32>
      %78 = arith.addf %75, %77 : vector<4x1xf32>
      %cst_50 = arith.constant 0.000000e+00 : f32
      %79 = vector.broadcast %cst_50 : f32 to vector<4x1xf32>
      %80 = arith.cmpf oge, %78, %79 : vector<4x1xf32>
      %cst_51 = arith.constant 0.00999999977 : f32
      %81 = vector.broadcast %cst_51 : f32 to vector<4x1xf32>
      %82 = arith.mulf %81, %78 : vector<4x1xf32>
      %83 = arith.select %80, %78, %82 : vector<4x1xi1>, vector<4x1xf32>
      %c1_52 = arith.constant 1 : index
      %c0_53 = arith.constant 0 : index
      %c0_54 = arith.constant 0 : index
      %84 = vector.load %arg2[%c1_52, %c0_53, %c0_54] : memref<2x4x1xf32, #tpu.memory_space<vmem>>, vector<1x4x1xf32>
      %85 = vector.shape_cast %84 : vector<1x4x1xf32> to vector<4x1xf32>
      %86 = arith.addf %83, %85 : vector<4x1xf32>
      %cst_55 = arith.constant 2.000000e+00 : f32
      %87 = vector.broadcast %cst_55 : f32 to vector<4x1xf32>
      %88 = arith.mulf %86, %87 : vector<4x1xf32>
      %cst_56 = arith.constant dense<0xFF800000> : vector<1xf32>
      %89 = vector.multi_reduction <maximumf>, %88, %cst_56 [0] : vector<4x1xf32> to vector<1xf32>
      %90 = vector.shape_cast %89 : vector<1xf32> to vector<1x1xf32>
      %91 = vector.broadcast %90 : vector<1x1xf32> to vector<4x1xf32>
      %92 = arith.subf %88, %91 : vector<4x1xf32>
      %93 = math.exp %92 : vector<4x1xf32>
      %cst_57 = arith.constant dense<0.000000e+00> : vector<1xf32>
      %94 = vector.multi_reduction <add>, %93, %cst_57 [0] : vector<4x1xf32> to vector<1xf32>
      %95 = vector.shape_cast %94 : vector<1xf32> to vector<1x1xf32>
      %96 = vector.broadcast %95 : vector<1x1xf32> to vector<4x1xf32>
      %97 = arith.divf %93, %96 : vector<4x1xf32>
      %98 = vector.shape_cast %97 : vector<4x1xf32> to vector<4x1x1xf32>
      %99 = vector.broadcast %98 : vector<4x1x1xf32> to vector<4x4x32xf32>
      %100 = arith.mulf %99, %67 : vector<4x4x32xf32>
      %cst_58 = arith.constant dense<0.000000e+00> : vector<4x32xf32>
      %101 = vector.multi_reduction <add>, %100, %cst_58 [0] : vector<4x4x32xf32> to vector<4x32xf32>
      %102 = arith.select %50, %23, %45 : vector<16x32xi1>, vector<16x32xf32>
      %c1_59 = arith.constant 1 : index
      %c0_60 = arith.constant 0 : index
      %c0_61 = arith.constant 0 : index
      %103 = vector.load %arg7[%c1_59, %c0_60, %c0_61] : memref<2x16x32xf32, #tpu.memory_space<vmem>>, vector<1x16x32xf32>
      %104 = vector.shape_cast %103 : vector<1x16x32xf32> to vector<16x32xf32>
      %105 = vector.shape_cast %102 : vector<16x32xf32> to vector<1x16x32xf32>
      tpu.vector_store %arg7[%c1_59, %c0_60, %c0_61], %105 {strides = array<i32>} : memref<2x16x32xf32, #tpu.memory_space<vmem>>, vector<1x16x32xf32>,
      %c1_62 = arith.constant 1 : index
      %106 = arith.index_cast %42 : i32 to index
      %c0_63 = arith.constant 0 : index
      %107 = vector.load %arg7[%c1_62, %106, %c0_63] : memref<2x16x32xf32, #tpu.memory_space<vmem>>, vector<1x4x32xf32>
      %108 = vector.shape_cast %107 : vector<1x4x32xf32> to vector<4x32xf32>
      %109 = vector.shape_cast %101 : vector<4x32xf32> to vector<1x4x32xf32>
      tpu.vector_store %arg7[%c1_62, %106, %c0_63], %109 {strides = array<i32>} : memref<2x16x32xf32, #tpu.memory_space<vmem>>, vector<1x4x32xf32>,
    } else {
    }
    %c1_24 = arith.constant 1 : index
    %c2_25 = arith.constant 2 : index
    %30 = memref.load %arg0[%c1_24, %c2_25] : memref<2x4xi32, #tpu.memory_space<smem>>
    %c0_26 = arith.constant 0 : index
    %c0_27 = arith.constant 0 : index
    %31 = vector.load %arg6[%c0_26, %c0_27] : memref<2x32xf32, #tpu.memory_space<vmem>>, vector<1x32xf32>
    %c1_28 = arith.constant 1 : index
    %32 = arith.index_cast %30 : i32 to index
    %c0_29 = arith.constant 0 : index
    %33 = vector.load %arg7[%c1_28, %32, %c0_29] : memref<2x16x32xf32, #tpu.memory_space<vmem>>, vector<1x1x32xf32>
    %34 = vector.shape_cast %33 : vector<1x1x32xf32> to vector<1x32xf32>
    %35 = vector.shape_cast %31 : vector<1x32xf32> to vector<1x1x32xf32>
    tpu.vector_store %arg7[%c1_28, %32, %c0_29], %35 {strides = array<i32>} : memref<2x16x32xf32, #tpu.memory_space<vmem>>, vector<1x1x32xf32>,
    %c1_30 = arith.constant 1 : index
    %c3_31 = arith.constant 3 : index
    %36 = memref.load %arg0[%c1_30, %c3_31] : memref<2x4xi32, #tpu.memory_space<smem>>
    %c1_32 = arith.constant 1 : index
    %c0_33 = arith.constant 0 : index
    %37 = vector.load %arg6[%c1_32, %c0_33] : memref<2x32xf32, #tpu.memory_space<vmem>>, vector<1x32xf32>
    %c1_34 = arith.constant 1 : index
    %38 = arith.index_cast %36 : i32 to index
    %c0_35 = arith.constant 0 : index
    %39 = vector.load %arg7[%c1_34, %38, %c0_35] : memref<2x16x32xf32, #tpu.memory_space<vmem>>, vector<1x1x32xf32>
    %40 = vector.shape_cast %39 : vector<1x1x32xf32> to vector<1x32xf32>
    %41 = vector.shape_cast %37 : vector<1x32xf32> to vector<1x1x32xf32>
    tpu.vector_store %arg7[%c1_34, %38, %c0_35], %41 {strides = array<i32>} : memref<2x16x32xf32, #tpu.memory_space<vmem>>, vector<1x1x32xf32>,
    return
  }
}

</mosaic_0001>

<bundles_post_ra>
// kernel: generate_inputs.1
= control target key start
LH: loop header
LB: loop body
LE: loop exit
PB: predicated region body
PF: predicated region fallthrough
CT: control target
= control target key end

     0   :  { %s868_s0 = inlined_call_operand.vmem [shape: s32[2,4], index: 0, kind: input, shape index: {}]   ;;  %s869_s1 = inlined_call_operand.vmem [shape: f32[2,16,32], index: 1, kind: input, shape index: {}]   ;;  %s870_s2 = inlined_call_operand.vmem [shape: f32[2,4,1], index: 2, kind: input, shape index: {}]   ;;  %s871_s3 = inlined_call_operand.vmem [shape: f32[16,32], index: 3, kind: input, shape index: {}]   ;;  %s872_s4 = inlined_call_operand.<no memory space> [shape: f32[1,1], index: 4, kind: input, shape index: {}]   ;;  %s873_s5 = inlined_call_operand.vmem [shape: f32[4,4,32], index: 5, kind: input, shape index: {}]   ;;  %s874_s6 = inlined_call_operand.vmem [shape: f32[2,32], index: 6, kind: input, shape index: {}]   ;;  %s875_s7 = inlined_call_operand.hbm [shape: f32[2,16,32], index: 7, kind: output, shape index: {}]  }
   0x1   :  { %12 = sst [smem:[#allocation2]] %s872_s4 }
   0x2   :  { %13 = vsyncpa [#allocation5], 0 }
   0x3   :  { %14 = vsyncpa [#allocation4], 0  ;;  %s21_s28 = sshll.u32 %s868_s0, 4  ;;  %s22_s28 = int_to_ptr.vmem [resolvable:$true] %s21_s28 }
   0x4   :  { %s568_s29 = scalar_lea.vmem %s22_s28, 32  ;;  %p573_p1 = scmp.lt.s32.totalorder %s22_s28, %s22_s28 }
   0x5   :  { %p569_p0 = scmp.ne.s32.totalorder %s22_s28, %s568_s29  ;;  %p574_p2 = scmp.lt.s32.totalorder %s568_s29, %s568_s29 }
   0x7   :  { %p575_p3 = por %p574_p2, %p573_p1 }
   0x9   :  { %p576_p4 = pnand %p575_p3, %p569_p0 }
   0xb   :  { %579 = shalt.err (!%p576_p4)
}
   0xc   :  { %s606_s30 = smov [#allocation3]  }
   0xd   :  { %24 = dma.vmem_to_smem %s22_s28, 32, %s606_s30, [#allocation5]  }
   0xe   :  { %602 = dma.done.wait [#allocation5], 32  }
   0xf   :  { %603 = vsyncadd [#allocation5], 4294967264 }
  0x10   :  { %40 = sfence }
  0x11   :  { %s531_s4 = sld [smem:[#allocation3 + $0x1]]  ;;  %v42_v0 = vld [vmem:[%s869_s1] sm:$0xff]  ;;  %v43_v1 = vld [vmem:[%s869_s1 + $0x8] sm:$0xff] }
  0x17   :  { %p532_p5 = scmp.ne.s32.totalorder %s531_s4, 0 }
  0x18   :  { %vm48_vm0 = vcmask (!%p532_p5), 261120  }
  0x19   :  { %47 = sbr.rel (%p532_p5) target bundleno = 32 (0x20), region = 37  ;;  %49 = vst.msk [vmem:[#allocation6] sm:$0xff] (!%p532_p5), %vm48_vm0, %v42_v0  ;;  %50 = vst.msk [vmem:[#allocation6 + $0x8] sm:$0xff] (!%p532_p5), %vm48_vm0, %v43_v1 }
  0x20 PF:  { %p533_p6 = scmp.ne.s32.totalorder %s531_s4, 1 }
  0x21   :  { %s666_s11 = sld [smem:[#allocation3]] (!%p533_p6)  ;;  %v56_v2 = vlaneseq (!%p533_p6)  ;;  %v673_v4 = vld [vmem:[%s873_s5] sm:$0xf] (!%p533_p6)  ;;  %v680_v7 = vld [vmem:[%s873_s5 + $0x8] sm:$0xf] (!%p533_p6)  ;;  %vm110_vm1 = vcmask (!%p533_p6), 257024  }
  0x22   :  { %54 = sbr.rel (%p533_p6) target bundleno = 551 (0x227), region = 41  ;;  %v685_v8 = vld [vmem:[%s873_s5 + $0x4] sm:$0xf] (!%p533_p6)  ;;  %v690_v9 = vld [vmem:[%s873_s5 + $0xc] sm:$0xf] (!%p533_p6)  ;;  %vm86_vm2 = vcmask (!%p533_p6), 261120  }
  0x23   :  { %v668_v3 = vshrl.u32 (!%p533_p6), %v56_v2, 7  ;;  %v79_v24 = vld [vmem:[%s871_s3 + $0x8] sm:$0xff] (!%p533_p6)  ;;  %v78_v25 = vld [vmem:[%s871_s3] sm:$0xff] (!%p533_p6)  ;;  %v128_v36 = vand.u32 (!%p533_p6), 127, %v56_v2  ;;  %vm145_vm7 = vcmask (!%p533_p6), 1041409   ;;  %vm147_vm8 = vcmask (!%p533_p6), 1042434  }
  0x24   :  { %vm149_vm9 = vcmask (!%p533_p6), 1043459   ;;  %vm152_vm10 = vcmask (!%p533_p6), 27648   ;;  %v607_v50 = vmov (!%p533_p6), 0   ;;  %s157_s28 = sld [smem:[#allocation2]] (!%p533_p6)  ;;  %vm166_vm12 = vcmask (!%p533_p6), 3072  }
  0x25   :  { %v58_v5 = vsub.s32 (!%p533_p6), 7, %v668_v3  ;;  %v62_v6 = vadd.s32 (!%p533_p6), 8, %v668_v3  ;;  %v131_v39 = vsub.s32 (!%p533_p6), %v128_v36, %v668_v3  ;;  %556 = vset.pattern.permute.xlu1 (!%p533_p6), %v607_v50  ;;  %557 = vset.pattern.permute.xlu0 (!%p533_p6), %v607_v50 }
  0x27   :  { %s100_s22 = scalar_lea.vmem (!%p533_p6), %s871_s3, %s666_s11  ;;  %v63_v10 = vstv (!%p533_p6), %s666_s11  ;;  %s70_s23 = sadd.s32 (!%p533_p6), 4, %s666_s11  ;;  %v59_v12 = vrot.slane (!%p533_p6), %v43_v1, %v58_v5 }
  0x28   :  { %v101_v11 = vld [vmem:[%s100_s22] sm:$0xf] (!%p533_p6)  ;;  %vm698_vm3 = vcmp.lt.s32.totalorder (!%p533_p6), %v62_v6, %v63_v10  ;;  %v71_v14 = vstv (!%p533_p6), %s70_s23  ;;  %vm703_vm4 = vcmp.lt.s32.totalorder (!%p533_p6), %v668_v3, %v63_v10  ;;  %s258_s4 = scalar_lea.vmem (!%p533_p6), [#allocation6], %s666_s11 }
  0x29   :  { %v106_v16 = vmul.f32 %v673_v4, %v101_v11  ;;  %v108_v17 = vmul.f32 %v680_v7, %v101_v11  ;;  %v107_v18 = vmul.f32 %v685_v8, %v101_v11  ;;  %v109_v19 = vmul.f32 %v690_v9, %v101_v11 }
  0x2a   :  { %vm73_vm5 = vcmp.ge.s32.totalorder %v62_v6, %v71_v14  ;;  %v255_v20 = vsel %vm698_vm3, %v43_v1, %v59_v12  ;;  %vm72_vm6 = vcmp.ge.s32.totalorder %v668_v3, %v71_v14  ;;  %v254_v21 = vsel %vm703_vm4, %v42_v0, %v59_v12 }
  0x2b   :  { %v111_v22 = vsel %vm110_vm1, %v106_v16, 0.0  ;;  %v117_v23 = vsel %vm110_vm1, %v108_v17, 0.0  ;;  %257 = vst.msk [vmem:[#allocation6 + $0x8] sm:$0xff] %vm86_vm2, %v255_v20  ;;  %256 = vst.msk [vmem:[#allocation6] sm:$0xff] %vm86_vm2, %v254_v21  ;;  %v81_v26 = vsel %vm73_vm5, %v59_v12, 0.0  ;;  %v80_v27 = vsel %vm72_vm6, %v59_v12, 0.0 }
  0x2c   :  { %112 = vadd.xlane.f32.xlu0 %v111_v22  ;;  %118 = vadd.xlane.f32.xlu1 %v117_v23  ;;  %v114_v28 = vsel %vm110_vm1, %v107_v18, 0.0  ;;  %v120_v29 = vsel %vm110_vm1, %v109_v19, 0.0  ;;  %v83_v30 = vsel %vm698_vm3, %v43_v1, %v81_v26  ;;  %v82_v31 = vsel %vm703_vm4, %v42_v0, %v80_v27  ;;  %v163_v0 = vld [vmem:[%s870_s2] sm:$0xf] }
  0x2d   :  { %v85_v32 = vmul.f32 %v83_v30, %v79_v24  ;;  %v84_v33 = vmul.f32 %v82_v31, %v78_v25  ;;  %v158_v60 = vstv %s157_s28  ;;  %v608_v27 = vmov 1966171168  }
  0x2f   :  { %v90_v34 = vsel %vm86_vm2, %v85_v32, 0.0  ;;  %v87_v35 = vsel %vm86_vm2, %v84_v33, 0.0 }
  0x30   :  { %115 = vadd.xlane.f32.xlu0 %v114_v28  ;;  %121 = vadd.xlane.f32.xlu1 %v120_v29  ;;  %v188_v28 = vunpack.c.l.s4 %v608_v27 }
  0x32   :  { %v189_v29 = vunpack.c.0.s8 %v188_v28 }
  0x34   :  { %91 = vadd.xlane.f32.xlu1 %v90_v34  ;;  %88 = vadd.xlane.f32.xlu0 %v87_v35  ;;  %v192_v30 = vsub.s32 %v189_v29, %v668_v3  ;;  %v213_v34 = vsub.s32 0, %v668_v3 }
  0xb9   :  { %v113_v37 = vpop.xlane.xlu0 %112  ;;  %v119_v38 = vpop.xlane.xlu1 %118 }
  0xba   :  { %v132_v42 = vrot.slane %v113_v37, %v131_v39  ;;  %v140_v45 = vrot.slane %v119_v38, %v131_v39 }
  0xbd   :  { %v116_v40 = vpop.xlane.xlu0 %115  ;;  %v122_v41 = vpop.xlane.xlu1 %121 }
  0xbe   :  { %v136_v43 = vrot.slane %v116_v40, %v131_v39  ;;  %v144_v44 = vrot.slane %v122_v41, %v131_v39 }
  0xc0   :  { %v146_v46 = vsel %vm145_vm7, %v136_v43, %v132_v42 }
  0xc1   :  { %v148_v47 = vsel %vm147_vm8, %v140_v45, %v146_v46  ;;  %v92_v51 = vpop.xlane.xlu1 %91  ;;  %v89_v52 = vpop.xlane.xlu0 %88 }
  0xc2   :  { %v150_v48 = vsel %vm149_vm9, %v144_v44, %v148_v47  ;;  %v93_v53 = vadd.f32 %v92_v51, %v89_v52 }
  0xc3   :  { %v153_v49 = vsel %vm152_vm10, %v150_v48, 0.0 }
  0xc4   :  { %154 = vadd.xlane.f32.xlu0 %v153_v49  ;;  %v94_v54 = vrot.slane %v93_v53, 4 }
  0xc6   :  { %v95_v55 = vadd.f32 %v94_v54, %v93_v53 }
  0xc8   :  { %v96_v56 = vrot.slane %v95_v55, 2 }
  0xca   :  { %v97_v57 = vadd.f32 %v96_v56, %v95_v55 }
  0xcc   :  { %v98_v58 = vrot.slane %v97_v57, 1 }
  0xce   :  { %v99_v59 = vadd.f32 %v98_v58, %v97_v57 }
 0x151   :  { %v155_v61 = vpop.xlane.xlu0 %154 }
 0x152   :  { %v156_v62 = vadd.f32 %v155_v61, %v99_v59 }
 0x154   :  { %v159_v63 = vadd.f32 %v158_v60, %v156_v62 }
 0x156   :  { %vm160_vm11 = vcmp.ge.f32.partialorder %v159_v63, 0.0  ;;  %v161_v1 = vmul.f32 0.01, %v159_v63 }
 0x158   :  { %v162_v2 = vsel %vm160_vm11, %v159_v63, %v161_v1 }
 0x159   :  { %v164_v5 = vadd.f32 %v163_v0, %v162_v2 }
 0x15b   :  { %v165_v6 = vmul.f32 2.0, %v164_v5 }
 0x15d   :  { %v167_v10 = vsel %vm166_vm12, %v165_v6, -inf }
 0x15e   :  { %v168_v11 = vrot.slane %v167_v10, 4 }
 0x160   :  { %v169_v12 = vmax.f32 %v167_v10, %v168_v11 }
 0x162   :  { %v170_v13 = vrot.slane %v169_v12, 2 }
 0x164   :  { %v171_v14 = vmax.f32 %v169_v12, %v170_v13 }
 0x166   :  { %v172_v15 = vrot.slane %v171_v14, 1 }
 0x168   :  { %v173_v16 = vmax.f32 %v171_v14, %v172_v15 }
 0x16a   :  { %v174_v17 = vsub.f32 %v165_v6, %v173_v16 }
 0x16c   :  { %v175_v18 = vmul.f32 1.442695, %v174_v17 }
 0x16e   :  { %558 = vpow2.f32 %v175_v18 }
 0x178   :  { %v559_v19 = vpop.eup %558 }
 0x179   :  { %v177_v20 = vsel %vm166_vm12, %v559_v19, 0.0 }
 0x17a   :  { %v178_v21 = vrot.slane %v177_v20, 4 }
 0x17c   :  { %v179_v22 = vadd.f32 %v178_v21, %v177_v20 }
 0x17e   :  { %v180_v23 = vrot.slane %v179_v22, 2 }
 0x180   :  { %v181_v24 = vadd.f32 %v180_v23, %v179_v22 }
 0x182   :  { %v182_v25 = vrot.slane %v181_v24, 1 }
 0x184   :  { %v183_v26 = vadd.f32 %v182_v25, %v181_v24 }
 0x186   :  { %560 = vrcp.f32 %v183_v26 }
 0x190   :  { %v561_v31 = vpop.eup %560 }
 0x191   :  { %v185_v32 = vmul.f32 %v561_v31, %v559_v19 }
 0x193   :  { %v193_v33 = vrot.slane %v185_v32, %v192_v30 }
 0x195   :  { %v201_v35 = vrot.slane %v193_v33, %v192_v30  ;;  %v194_v36 = vcombine.high %v193_v33, %v193_v33 }
 0x197   :  { %v214_v37 = vrot.slane %v201_v35, %v213_v34  ;;  %v208_v38 = vrot.slane %v194_v36, %v192_v30  ;;  %v209_v39 = vcombine.high %v201_v35, %v201_v35 }
 0x199   :  { %228 = vperm.xlu1 %556, %v214_v37   ;;  %v218_v40 = vrot.slane %v208_v38, %v213_v34  ;;  %v222_v41 = vrot.slane %v209_v39, %v213_v34  ;;  %v210_v42 = vcombine.high %v208_v38, %v208_v38 }
 0x19b   :  { %232 = vperm.xlu0 %557, %v218_v40   ;;  %v226_v43 = vrot.slane %v210_v42, %v213_v34 }
 0x19d   :  { %236 = vperm.xlu1 %556, %v222_v41  }
 0x1a1   :  { %240 = vperm.xlu1 %556, %v226_v43  }
 0x218   :  { %v229_v44 = vpop.permute.xlu1 %228 }
 0x219   :  { %v243_v45 = vmul.f32 %v229_v44, %v673_v4 }
 0x21a   :  { %v233_v46 = vpop.permute.xlu0 %232 }
 0x21b   :  { %v244_v3 = vmul.f32 %v233_v46, %v685_v8  ;;  %v247_v48 = vsel %vm110_vm1, %v243_v45, 0.0 }
 0x21c   :  { %v237_v47 = vpop.permute.xlu1 %236 }
 0x21d   :  { %v248_v49 = vsel %vm110_vm1, %v244_v3, 0.0  ;;  %v245_v50 = vmul.f32 %v237_v47, %v680_v7 }
 0x21e   :  { %v249_v51 = vadd.f32 %v248_v49, %v247_v48 }
 0x21f   :  { %v250_v52 = vsel %vm110_vm1, %v245_v50, 0.0 }
 0x220   :  { %v241_v53 = vpop.permute.xlu1 %240  ;;  %v251_v55 = vadd.f32 %v250_v52, %v249_v51 }
 0x221   :  { %v246_v54 = vmul.f32 %v241_v53, %v690_v9 }
 0x223   :  { %v252_v56 = vsel %vm110_vm1, %v246_v54, 0.0 }
 0x224   :  { %v253_v4 = vadd.f32 %v252_v56, %v251_v55 }
 0x226   :  { %259 = vst.msk [vmem:[%s258_s4] sm:$0xf] %vm110_vm1, %v253_v4 }
 0x227 PF:  { %s534_s8 = sld [smem:[#allocation3 + $0x2]]  ;;  %v537_v8 = vld [vmem:[%s869_s1 + $0x10] sm:$0xff]  ;;  %s535_s0 = sld [smem:[#allocation3 + $0x3]]  ;;  %v538_v7 = vld [vmem:[%s869_s1 + $0x18] sm:$0xff]  ;;  %v261_v9 = vld [vmem:[%s874_s6] sm:$0x1] }
 0x228   :  { %s536_s12 = sld [smem:[#allocation3 + $0x81]]  ;;  %vm263_vm13 = vcmask 253952   ;;  %v266_v57 = vld [vmem:[%s874_s6 + $0x1] sm:$0x1] }
 0x22d   :  { %s262_s18 = scalar_lea.vmem [#allocation6], %s534_s8  ;;  %s267_s19 = scalar_lea.vmem [#allocation6], %s535_s0 }
 0x22e   :  { %264 = vst.msk [vmem:[%s262_s18] sm:$0x1] %vm263_vm13, %v261_v9  ;;  %p539_p7 = scmp.ne.s32.totalorder %s536_s12, 0 }
 0x22f   :  { %268 = vst.msk [vmem:[%s267_s19] sm:$0x1] %vm263_vm13, %v266_v57  ;;  %vm278_vm14 = vcmask (!%p539_p7), 261120  }
 0x230   :  { %276 = sbr.rel (%p539_p7) target bundleno = 567 (0x237), region = 45  ;;  %279 = vst.msk [vmem:[#allocation6 + $0x10] sm:$0xff] (!%p539_p7), %vm278_vm14, %v537_v8  ;;  %280 = vst.msk [vmem:[#allocation6 + $0x18] sm:$0xff] (!%p539_p7), %vm278_vm14, %v538_v7 }
 0x237 PF:  { %p540_p8 = scmp.ne.s32.totalorder %s536_s12, 1 }
 0x238   :  { %s764_s1 = sld [smem:[#allocation3 + $0x80]] (!%p540_p8)  ;;  %v286_v58 = vlaneseq (!%p540_p8)  ;;  %v771_v60 = vld [vmem:[%s873_s5] sm:$0xf] (!%p540_p8)  ;;  %v778_v63 = vld [vmem:[%s873_s5 + $0x8] sm:$0xf] (!%p540_p8)  ;;  %vm340_vm15 = vcmask (!%p540_p8), 257024  }
 0x239   :  { %284 = sbr.rel (%p540_p8) target bundleno = 1086 (0x43e), region = 49  ;;  %v783_v0 = vld [vmem:[%s873_s5 + $0x4] sm:$0xf] (!%p540_p8)  ;;  %v788_v1 = vld [vmem:[%s873_s5 + $0xc] sm:$0xf] (!%p540_p8)  ;;  %vm316_vm0 = vcmask (!%p540_p8), 261120  }
 0x23a   :  { %v766_v59 = vshrl.u32 (!%p540_p8), %v286_v58, 7  ;;  %v309_v21 = vld [vmem:[%s871_s3 + $0x8] sm:$0xff] (!%p540_p8)  ;;  %v308_v22 = vld [vmem:[%s871_s3] sm:$0xff] (!%p540_p8)  ;;  %v358_v33 = vand.u32 (!%p540_p8), 127, %v286_v58  ;;  %vm375_vm5 = vcmask (!%p540_p8), 1041409   ;;  %vm377_vm6 = vcmask (!%p540_p8), 1042434  }
 0x23b   :  { %vm379_vm7 = vcmask (!%p540_p8), 1043459   ;;  %vm382_vm8 = vcmask (!%p540_p8), 27648   ;;  %v609_v3 = vmov (!%p540_p8), 0   ;;  %v542_v9 = vld [vmem:[%s870_s2 + $0x4] sm:$0xf] (!%p540_p8)  ;;  %vm397_vm10 = vcmask (!%p540_p8), 3072  }
 0x23c   :  { %v288_v61 = vsub.s32 (!%p540_p8), 7, %v766_v59  ;;  %v292_v62 = vadd.s32 (!%p540_p8), 8, %v766_v59  ;;  %v361_v36 = vsub.s32 (!%p540_p8), %v358_v33, %v766_v59  ;;  %562 = vset.pattern.permute.xlu1 (!%p540_p8), %v609_v3  ;;  %563 = vset.pattern.permute.xlu0 (!%p540_p8), %v609_v3 }
 0x23e   :  { %s330_s30 = scalar_lea.vmem (!%p540_p8), %s871_s3, %s764_s1  ;;  %v293_v2 = vstv (!%p540_p8), %s764_s1  ;;  %s300_s4 = sadd.s32 (!%p540_p8), 4, %s764_s1  ;;  %v289_v6 = vrot.slane (!%p540_p8), %v538_v7, %v288_v61 }
 0x23f   :  { %v331_v5 = vld [vmem:[%s330_s30] sm:$0xf] (!%p540_p8)  ;;  %vm796_vm1 = vcmp.lt.s32.totalorder (!%p540_p8), %v292_v62, %v293_v2  ;;  %v301_v11 = vstv (!%p540_p8), %s300_s4  ;;  %vm801_vm2 = vcmp.lt.s32.totalorder (!%p540_p8), %v766_v59, %v293_v2  ;;  %s387_s3 = sld [smem:[#allocation2]] (!%p540_p8)  ;;  %s525_s2 = scalar_lea.vmem (!%p540_p8), [#allocation6], %s764_s1 }
 0x240   :  { %v336_v13 = vmul.f32 %v771_v60, %v331_v5  ;;  %v338_v14 = vmul.f32 %v778_v63, %v331_v5  ;;  %v337_v15 = vmul.f32 %v783_v0, %v331_v5  ;;  %v339_v16 = vmul.f32 %v788_v1, %v331_v5 }
 0x241   :  { %vm303_vm3 = vcmp.ge.s32.totalorder %v292_v62, %v301_v11  ;;  %v486_v17 = vsel %vm796_vm1, %v538_v7, %v289_v6  ;;  %vm302_vm4 = vcmp.ge.s32.totalorder %v766_v59, %v301_v11  ;;  %v485_v18 = vsel %vm801_vm2, %v537_v8, %v289_v6 }
 0x242   :  { %v341_v19 = vsel %vm340_vm15, %v336_v13, 0.0  ;;  %v347_v20 = vsel %vm340_vm15, %v338_v14, 0.0  ;;  %489 = vst.msk [vmem:[#allocation6 + $0x18] sm:$0xff] %vm316_vm0, %v486_v17  ;;  %488 = vst.msk [vmem:[#allocation6 + $0x10] sm:$0xff] %vm316_vm0, %v485_v18  ;;  %v311_v23 = vsel %vm303_vm3, %v289_v6, 0.0  ;;  %v310_v24 = vsel %vm302_vm4, %v289_v6, 0.0 }
 0x243   :  { %342 = vadd.xlane.f32.xlu0 %v341_v19  ;;  %348 = vadd.xlane.f32.xlu1 %v347_v20  ;;  %v344_v25 = vsel %vm340_vm15, %v337_v15, 0.0  ;;  %v350_v26 = vsel %vm340_vm15, %v339_v16, 0.0  ;;  %v313_v27 = vsel %vm796_vm1, %v538_v7, %v311_v23  ;;  %v312_v28 = vsel %vm801_vm2, %v537_v8, %v310_v24 }
 0x244   :  { %v315_v29 = vmul.f32 %v313_v27, %v309_v21  ;;  %v314_v30 = vmul.f32 %v312_v28, %v308_v22  ;;  %v610_v24 = vmov 1966171168  }
 0x245   :  { %v388_v56 = vstv %s387_s3 }
 0x246   :  { %v320_v31 = vsel %vm316_vm0, %v315_v29, 0.0  ;;  %v317_v32 = vsel %vm316_vm0, %v314_v30, 0.0 }
 0x247   :  { %345 = vadd.xlane.f32.xlu0 %v344_v25  ;;  %351 = vadd.xlane.f32.xlu1 %v350_v26  ;;  %v419_v25 = vunpack.c.l.s4 %v610_v24 }
 0x249   :  { %v420_v26 = vunpack.c.0.s8 %v419_v25 }
 0x24b   :  { %321 = vadd.xlane.f32.xlu1 %v320_v31  ;;  %318 = vadd.xlane.f32.xlu0 %v317_v32  ;;  %v423_v27 = vsub.s32 %v420_v26, %v766_v59  ;;  %v444_v31 = vsub.s32 0, %v766_v59 }
 0x2d0   :  { %v343_v34 = vpop.xlane.xlu0 %342  ;;  %v349_v35 = vpop.xlane.xlu1 %348 }
 0x2d1   :  { %v362_v39 = vrot.slane %v343_v34, %v361_v36  ;;  %v370_v42 = vrot.slane %v349_v35, %v361_v36 }
 0x2d4   :  { %v346_v37 = vpop.xlane.xlu0 %345  ;;  %v352_v38 = vpop.xlane.xlu1 %351 }
 0x2d5   :  { %v366_v40 = vrot.slane %v346_v37, %v361_v36  ;;  %v374_v41 = vrot.slane %v352_v38, %v361_v36 }
 0x2d7   :  { %v376_v43 = vsel %vm375_vm5, %v366_v40, %v362_v39 }
 0x2d8   :  { %v378_v44 = vsel %vm377_vm6, %v370_v42, %v376_v43  ;;  %v322_v47 = vpop.xlane.xlu1 %321  ;;  %v319_v48 = vpop.xlane.xlu0 %318 }
 0x2d9   :  { %v380_v45 = vsel %vm379_vm7, %v374_v41, %v378_v44  ;;  %v323_v49 = vadd.f32 %v322_v47, %v319_v48 }
 0x2da   :  { %v383_v46 = vsel %vm382_vm8, %v380_v45, 0.0 }
 0x2db   :  { %384 = vadd.xlane.f32.xlu0 %v383_v46  ;;  %v324_v50 = vrot.slane %v323_v49, 4 }
 0x2dd   :  { %v325_v51 = vadd.f32 %v324_v50, %v323_v49 }
 0x2df   :  { %v326_v52 = vrot.slane %v325_v51, 2 }
 0x2e1   :  { %v327_v53 = vadd.f32 %v326_v52, %v325_v51 }
 0x2e3   :  { %v328_v54 = vrot.slane %v327_v53, 1 }
 0x2e5   :  { %v329_v55 = vadd.f32 %v328_v54, %v327_v53 }
 0x368   :  { %v385_v4 = vpop.xlane.xlu0 %384 }
 0x369   :  { %v386_v8 = vadd.f32 %v385_v4, %v329_v55 }
 0x36b   :  { %v389_v7 = vadd.f32 %v388_v56, %v386_v8 }
 0x36d   :  { %vm390_vm9 = vcmp.ge.f32.partialorder %v389_v7, 0.0  ;;  %v391_v57 = vmul.f32 0.01, %v389_v7 }
 0x36f   :  { %v392_v58 = vsel %vm390_vm9, %v389_v7, %v391_v57 }
 0x370   :  { %v395_v61 = vadd.f32 %v542_v9, %v392_v58 }
 0x372   :  { %v396_v62 = vmul.f32 2.0, %v395_v61 }
 0x374   :  { %v398_v2 = vsel %vm397_vm10, %v396_v62, -inf }
 0x375   :  { %v399_v5 = vrot.slane %v398_v2, 4 }
 0x377   :  { %v400_v6 = vmax.f32 %v398_v2, %v399_v5 }
 0x379   :  { %v401_v10 = vrot.slane %v400_v6, 2 }
 0x37b   :  { %v402_v11 = vmax.f32 %v400_v6, %v401_v10 }
 0x37d   :  { %v403_v12 = vrot.slane %v402_v11, 1 }
 0x37f   :  { %v404_v13 = vmax.f32 %v402_v11, %v403_v12 }
 0x381   :  { %v405_v14 = vsub.f32 %v396_v62, %v404_v13 }
 0x383   :  { %v406_v15 = vmul.f32 1.442695, %v405_v14 }
 0x385   :  { %564 = vpow2.f32 %v406_v15 }
 0x38f   :  { %v565_v16 = vpop.eup %564 }
 0x390   :  { %v408_v17 = vsel %vm397_vm10, %v565_v16, 0.0 }
 0x391   :  { %v409_v18 = vrot.slane %v408_v17, 4 }
 0x393   :  { %v410_v19 = vadd.f32 %v409_v18, %v408_v17 }
 0x395   :  { %v411_v20 = vrot.slane %v410_v19, 2 }
 0x397   :  { %v412_v21 = vadd.f32 %v411_v20, %v410_v19 }
 0x399   :  { %v413_v22 = vrot.slane %v412_v21, 1 }
 0x39b   :  { %v414_v23 = vadd.f32 %v413_v22, %v412_v21 }
 0x39d   :  { %566 = vrcp.f32 %v414_v23 }
 0x3a7   :  { %v567_v28 = vpop.eup %566 }
 0x3a8   :  { %v416_v29 = vmul.f32 %v567_v28, %v565_v16 }
 0x3aa   :  { %v424_v30 = vrot.slane %v416_v29, %v423_v27 }
 0x3ac   :  { %v432_v32 = vrot.slane %v424_v30, %v423_v27  ;;  %v425_v33 = vcombine.high %v424_v30, %v424_v30 }
 0x3ae   :  { %v445_v34 = vrot.slane %v432_v32, %v444_v31  ;;  %v439_v35 = vrot.slane %v425_v33, %v423_v27  ;;  %v440_v36 = vcombine.high %v432_v32, %v432_v32 }
 0x3b0   :  { %459 = vperm.xlu1 %562, %v445_v34   ;;  %v449_v37 = vrot.slane %v439_v35, %v444_v31  ;;  %v453_v38 = vrot.slane %v440_v36, %v444_v31  ;;  %v441_v39 = vcombine.high %v439_v35, %v439_v35 }
 0x3b2   :  { %463 = vperm.xlu0 %563, %v449_v37   ;;  %v457_v40 = vrot.slane %v441_v39, %v444_v31 }
 0x3b4   :  { %467 = vperm.xlu1 %562, %v453_v38  }
 0x3b8   :  { %471 = vperm.xlu1 %562, %v457_v40  }
 0x42f   :  { %v460_v41 = vpop.permute.xlu1 %459 }
 0x430   :  { %v474_v42 = vmul.f32 %v460_v41, %v771_v60 }
 0x431   :  { %v464_v43 = vpop.permute.xlu0 %463 }
 0x432   :  { %v475_v59 = vmul.f32 %v464_v43, %v783_v0  ;;  %v478_v45 = vsel %vm340_vm15, %v474_v42, 0.0 }
 0x433   :  { %v468_v44 = vpop.permute.xlu1 %467 }
 0x434   :  { %v479_v46 = vsel %vm340_vm15, %v475_v59, 0.0  ;;  %v476_v3 = vmul.f32 %v468_v44, %v778_v63 }
 0x435   :  { %v480_v47 = vadd.f32 %v479_v46, %v478_v45 }
 0x436   :  { %v481_v48 = vsel %vm340_vm15, %v476_v3, 0.0 }
 0x437   :  { %v472_v49 = vpop.permute.xlu1 %471  ;;  %v482_v51 = vadd.f32 %v481_v48, %v480_v47 }
 0x438   :  { %v477_v50 = vmul.f32 %v472_v49, %v788_v1 }
 0x43a   :  { %v483_v52 = vsel %vm340_vm15, %v477_v50, 0.0 }
 0x43b   :  { %v484_v60 = vadd.f32 %v483_v52, %v482_v51 }
 0x43d   :  { %543 = vst.msk [vmem:[%s525_s2 + $0x10] sm:$0xf] %vm340_vm15, %v484_v60 }
 0x43e PF:  { %s544_s13 = sld [smem:[#allocation3 + $0x82]]  ;;  %s546_s14 = sld [smem:[#allocation3 + $0x83]]  ;;  %v494_v63 = vld [vmem:[%s874_s6] sm:$0x1]  ;;  %v499_v0 = vld [vmem:[%s874_s6 + $0x1] sm:$0x1] }
 0x43f   :  { %s611_s15 = smov [#allocation6]  }
 0x440   :  { %s508_s16 = sshll.u32 %s611_s15, 4  ;;  %s509_s16 = int_to_ptr.vmem [resolvable:$true] %s508_s16 }
 0x441   :  { %s580_s21 = scalar_lea.vmem %s509_s16, 512  ;;  %p585_p10 = scmp.lt.s32.totalorder %s509_s16, %s509_s16 }
 0x442   :  { %p581_p9 = scmp.ne.s32.totalorder %s509_s16, %s580_s21  ;;  %p586_p11 = scmp.lt.s32.totalorder %s580_s21, %s580_s21 }
 0x444   :  { %s527_s20 = scalar_lea.vmem [#allocation6], %s544_s13  ;;  %s529_s1 = scalar_lea.vmem [#allocation6], %s546_s14 }
 0x445   :  { %545 = vst.msk [vmem:[%s527_s20 + $0x10] sm:$0x1] %vm263_vm13, %v494_v63  ;;  %p587_p12 = por %p586_p11, %p585_p10 }
 0x446   :  { %547 = vst.msk [vmem:[%s529_s1 + $0x10] sm:$0x1] %vm263_vm13, %v499_v0 }
 0x447   :  { %p588_p13 = pnand %p587_p12, %p581_p9 }
 0x449   :  { %591 = shalt.err (!%p588_p13)
}
 0x44a   :  { %s592_s24 = scalar_lea.hbm %s875_s7, 512 }
 0x44b   :  { %p593_p0 = scmp.ne.s32.totalorder %s875_s7, %s592_s24  ;;  %p596_p1 = scmp.lt.u32.totalorder %s592_s24, %s875_s7 }
 0x44d   :  { %p598_p2 = pnand %p596_p1, %p593_p0 }
 0x44f   :  { %601 = shalt.err (!%p598_p2)
}
 0x450   :  { %s612_s28 = smov 128   ;;  %s613_s29 = smov 8  }
 0x451   :  { %514 = dma.vmem_to_hbm [thread:$0]  %s509_s16, 512, %s875_s7, [#allocation4], %s612_s28, %s612_s28, %s613_s29  }
 0x452   :  { %604 = dma.done.wait [#allocation4], 512  }
 0x453   :  { %605 = vsyncadd [#allocation4], 4294966784 }
 0x454   :  { %518 = vsyncpa [#allocation4], 1 }
 0x455   :  { %519 = vsyncpa [#allocation5], 1 }

</bundles_post_ra>
